<compile_context>
chip_gen: v7x
topology: tpu7x:2x2x1
jax: 0.10.0
libtpu: 0.0.40
codegen_flags: <defaults>
</compile_context>

<pallas_src>
import jax
import jax.numpy as jnp
from jax import lax
from jax.experimental import pallas as pl
from jax.experimental.pallas import tpu as pltpu

DIMS = 768          # Classifier2 input size (fixed by the module: dims = 768)
CLASSES = 2         # Classifier2 output size
NEG_SLOPE = 0.01    # LeakyReLU negative slope
GAMMAS = 0.5        # stand-in for config.gammas
SLAB = 4 * CLASSES  # packed output sublanes: p1 | p2 | A | B  (2 rows each)


def _round_up(x, m):
    return ((x + m - 1) // m) * m


def _gated_ds_kernel(fea1_ref, fea2_ref, wt_ref, bias_ref, scal_ref, out_ref):
    # SMEM scalars: [u1, u2]
    u1 = scal_ref[0]
    u2 = scal_ref[1]

    # W^T padded to 8 sublane rows (rows 2..7 zero).  Tiny; cast once per tile.
    wt = wt_ref[...].astype(jnp.bfloat16)                        # [8, D] bf16
    nt = (((1,), (1,)), ((), ()))                                # 'cd,td->ct'

    def classify(x_ref):
        # Native f32 row stream from HBM; bf16 MXU-operand cast is in-register.
        x = x_ref[...].astype(jnp.bfloat16)                      # [T, D] bf16
        z = lax.dot_general(wt, x, dimension_numbers=nt,
                            preferred_element_type=jnp.float32)  # [8, T] f32
        z = z + bias_ref[...]                                    # [8,1] lane-broadcast
        return jnp.where(z >= 0.0, z, NEG_SLOPE * z)             # LeakyReLU(0.01)
        # TODO(synk): nn.Dropout(p=0.5) is training-mode/stochastic in the torch
        # reference; it is treated as identity (eval mode) here.

    o1 = classify(fea1_ref)   # Classifier2(fea1): classes on sublanes 0..1
    o2 = classify(fea2_ref)   # Classifier2(fea2); sublanes 2..7 are harmless zeros

    # ---- Dempster-Shafer combination ----
    # (the F.pad in the torch reference is a no-op: both masses have equal width)
    m1A, m1B = o1, 1.0 - o1
    m2A, m2B = o2, 1.0 - o2
    mA = m1A * m2A + m1A * u2 + u1 * m2A
    mB = m1B * m2B + m1B * u2 + u1 * m2B
    # TODO(synk): like the torch code, K = 1 - conflict has no guard against ~0,
    # so A/B can blow up (inf/NaN) for adversarial inputs.
    K = 1.0 - (m1A * m2B + m1B * m2A)
    inv_k = pl.reciprocal(K, approx=False)     # one divide shared by A and B
    A = mA * inv_k                             # com_belief['A']
    Bv = mB * inv_k                            # com_belief['B']

    # ---- GatingMechanism: softmax over the stacked {A, B} axis ----
    # 2-way softmax == sigmoid(A - B); the denominator reciprocal rides the EUP.
    p1 = pl.reciprocal(1.0 + jnp.exp(Bv - A), approx=True)
    p2 = 1.0 - p1

    # Lane-dense slab writes: rows on lanes, p1|p2|A|B groups on sublanes.
    out_ref[0 * CLASSES:1 * CLASSES, :] = p1[:CLASSES, :]
    out_ref[1 * CLASSES:2 * CLASSES, :] = p2[:CLASSES, :]
    out_ref[2 * CLASSES:3 * CLASSES, :] = A[:CLASSES, :]
    out_ref[3 * CLASSES:4 * CLASSES, :] = Bv[:CLASSES, :]


def gated_ds_layer(fea1, fea2, uncer1, uncer2, w, b, *, tile_rows=1024):
    """Returns (predict, uncertainty, prob1, prob2, A, B) matching the torch forward."""
    N, D = fea1.shape
    assert D == DIMS and w.shape == (DIMS, CLASSES)

    # No dtype cast in the wrapper: the kernel reads the native f32 rows once.
    f1 = jnp.asarray(fea1, jnp.float32)
    f2 = jnp.asarray(fea2, jnp.float32)

    w32 = jnp.asarray(w, jnp.float32)
    b32 = jnp.asarray(b, jnp.float32).reshape(CLASSES)
    # W^T padded to 8 sublane rows; bias as an [8,1] column (rows 2..7 zero).
    wt = jnp.zeros((SLAB, DIMS), jnp.float32).at[:CLASSES, :].set(w32.T)
    bias = jnp.zeros((SLAB, 1), jnp.float32).at[:CLASSES, 0].set(b32)

    # Uncertainties ride as SMEM scalars.
    scal = jnp.stack([jnp.asarray(uncer1, jnp.float32),
                      jnp.asarray(uncer2, jnp.float32)])

    # Rows live on the lane axis of the output slab -> tiles are multiples of 128.
    # Keep >= 2 row tiles when there is enough work (v7x 2-TC sharding), and pick
    # a tile that divides the padded row count (no partial blocks, <=127 pad rows).
    n_pad = _round_up(max(N, 1), 128)
    cap = _round_up(max(tile_rows, 128), 128)
    if n_pad >= 2 * 128:
        cap = min(cap, _round_up(-(-n_pad // 2), 128))
    cap = min(cap, n_pad)
    tile = 128
    for cand in range(cap, 127, -128):
        if n_pad % cand == 0:
            tile = cand
            break

    if n_pad != N:
        pad = n_pad - N
        f1 = jnp.pad(f1, ((0, pad), (0, 0)))
        f2 = jnp.pad(f2, ((0, pad), (0, 0)))
    grid = (n_pad // tile,)

    out = pl.pallas_call(
        _gated_ds_kernel,
        grid=grid,
        out_shape=jax.ShapeDtypeStruct((SLAB, n_pad), jnp.float32),
        in_specs=[
            pl.BlockSpec((tile, DIMS), lambda i: (i, 0)),          # fea1 row tile
            pl.BlockSpec((tile, DIMS), lambda i: (i, 0)),          # fea2 row tile
            pl.BlockSpec((SLAB, DIMS), lambda i: (0, 0)),          # W^T (resident)
            pl.BlockSpec((SLAB, 1), lambda i: (0, 0)),             # bias column
            pl.BlockSpec(memory_space=pltpu.MemorySpace.SMEM),     # [u1, u2]
        ],
        out_specs=pl.BlockSpec((SLAB, tile), lambda i: (0, i)),    # p1|p2|A|B slab
        compiler_params=pltpu.CompilerParams(
            dimension_semantics=("parallel",),
            vmem_limit_bytes=32 * 1024 * 1024),
    )(f1, f2, wt, bias, scal)

    p1 = out[0 * CLASSES:1 * CLASSES, :N].T
    p2 = out[1 * CLASSES:2 * CLASSES, :N].T
    a_norm = out[2 * CLASSES:3 * CLASSES, :N].T
    b_norm = out[3 * CLASSES:4 * CLASSES, :N].T

    # Scalar glue (torch uses Python `if` on scalars); kept as jnp scalars so the
    # wrapper stays jit-safe.
    predict = jnp.where(p1[0, 0] > p2[0, 0], 1, 0).astype(jnp.int32)
    # torch checks m['A∪B'] = u1*u2 against gammas BEFORE the K normalization.
    uncertainty = scal[0] * scal[1] > GAMMAS
    return predict, uncertainty, p1, p2, a_norm, b_norm


def _reference(fea1, fea2, u1, u2, w, b):
    """Pure-JAX reference (dropout = identity) with the same bf16 MXU operands."""
    wf = jnp.asarray(w, jnp.float32).astype(jnp.bfloat16)
    bf = jnp.asarray(b, jnp.float32).reshape(CLASSES)

    def clf(x):
        z = jnp.dot(jnp.asarray(x, jnp.float32).astype(jnp.bfloat16), wf,
                    preferred_element_type=jnp.float32) + bf
        return jnp.where(z >= 0.0, z, NEG_SLOPE * z)

    o1, o2 = clf(fea1), clf(fea2)
    m1A, m1B, m2A, m2B = o1, 1.0 - o1, o2, 1.0 - o2
    mA = m1A * m2A + m1A * u2 + u1 * m2A
    mB = m1B * m2B + m1B * u2 + u1 * m2B
    K = 1.0 - (m1A * m2B + m1B * m2A)
    A, Bv = mA / K, mB / K
    probs = jax.nn.softmax(jnp.stack([A, Bv], axis=0), axis=0)
    p1, p2 = probs[0], probs[1]
    predict = jnp.where(p1[0, 0] > p2[0, 0], 1, 0).astype(jnp.int32)
    return predict, p1, p2, A, Bv


if __name__ == "__main__":
    key = jax.random.PRNGKey(0)
    kw, kb = jax.random.split(jax.random.fold_in(key, 7))

    # Deterministic Linear(768, 2) init (PyTorch-style uniform, bound 1/sqrt(fan_in))
    bound = 1.0 / (DIMS ** 0.5)
    w = jax.random.uniform(kw, (DIMS, CLASSES), minval=-bound, maxval=bound,
                           dtype=jnp.float32)
    b = jax.random.uniform(kb, (CLASSES,), minval=-bound, maxval=bound,
                           dtype=jnp.float32)
    uncer1, uncer2 = 0.3, 0.4

    # case 1: tiny batch (single 128-row tile); case 2: multi-tile grid
    for n_rows, tile_rows in ((8, 1024), (300, 128)):
        k1, k2 = jax.random.split(jax.random.fold_in(key, n_rows))
        fea1 = jax.random.normal(k1, (n_rows, DIMS), dtype=jnp.float32)
        fea2 = jax.random.normal(k2, (n_rows, DIMS), dtype=jnp.float32)

        predict, uncertainty, p1, p2, a_norm, b_norm = gated_ds_layer(
            fea1, fea2, uncer1, uncer2, w, b, tile_rows=tile_rows)
        jax.block_until_ready((predict, uncertainty, p1, p2, a_norm, b_norm))

        ref_pred, ref_p1, ref_p2, ref_a, ref_b = _reference(
            fea1, fea2, uncer1, uncer2, w, b)

        assert p1.shape == (n_rows, CLASSES) and a_norm.shape == (n_rows, CLASSES)
        # matched bf16 MXU operands + approx reciprocal on the gate denominator
        assert jnp.allclose(p1, ref_p1, atol=5e-3, rtol=5e-3)
        assert jnp.allclose(p2, ref_p2, atol=5e-3, rtol=5e-3)
        assert jnp.allclose(a_norm, ref_a, atol=5e-3, rtol=5e-3)
        assert jnp.allclose(b_norm, ref_b, atol=5e-3, rtol=5e-3)
        assert bool(uncertainty) == (uncer1 * uncer2 > GAMMAS)
        margin = float(jnp.abs(ref_p1[0, 0] - ref_p2[0, 0]))
        if margin > 1e-2:   # only compare the hard decision away from the tie point
            assert int(predict) == int(ref_pred)

    print("KERNEL_OK")
</pallas_src>

<mosaic_0001>
module attributes {stable_mosaic.version = 11 : i64} {
  func.func @_gated_ds_kernel(%arg0: i32, %arg1: memref<128x768xf32, #tpu.memory_space<vmem>>, %arg2: memref<128x768xf32, #tpu.memory_space<vmem>>, %arg3: memref<8x768xf32, #tpu.memory_space<vmem>>, %arg4: memref<8x1xf32, #tpu.memory_space<vmem>>, %arg5: memref<2xf32, #tpu.memory_space<smem>>, %arg6: memref<8x128xf32, #tpu.memory_space<vmem>>) attributes {dimension_semantics = [#tpu.dimension_semantics<parallel>], iteration_bounds = array<i64: 1>, scalar_prefetch = 0 : i64, scratch_operands = 0 : i64, tpu.core_type = #tpu.core_type<tc>, window_params = [{transform_indices = @transform_0, window_bounds = array<i64: 128, 768>}, {transform_indices = @transform_1, window_bounds = array<i64: 128, 768>}, {pipeline_mode = #tpu.pipeline_mode<synchronous>, transform_indices = @transform_2, window_bounds = array<i64: 8, 768>}, {pipeline_mode = #tpu.pipeline_mode<synchronous>, transform_indices = @transform_3, window_bounds = array<i64: 8, 1>}, {transform_indices = @transform_4, window_bounds = array<i64: 2>}, {transform_indices = @transform_5, window_bounds = array<i64: 8, 128>}]} {
    %c0 = arith.constant 0 : index
    %0 = memref.load %arg5[%c0] : memref<2xf32, #tpu.memory_space<smem>>
    %c1 = arith.constant 1 : index
    %1 = memref.load %arg5[%c1] : memref<2xf32, #tpu.memory_space<smem>>
    %c0_0 = arith.constant 0 : index
    %c0_1 = arith.constant 0 : index
    %2 = vector.load %arg3[%c0_0, %c0_1] : memref<8x768xf32, #tpu.memory_space<vmem>>, vector<8x768xf32>
    %3 = arith.truncf %2 : vector<8x768xf32> to vector<8x768xbf16>
    %c0_2 = arith.constant 0 : index
    %c0_3 = arith.constant 0 : index
    %4 = vector.load %arg1[%c0_2, %c0_3] : memref<128x768xf32, #tpu.memory_space<vmem>>, vector<128x768xf32>
    %5 = arith.truncf %4 : vector<128x768xf32> to vector<128x768xbf16>
    %cst = arith.constant dense<0.000000e+00> : vector<8x128xf32>
    %6 = tpu.matmul %3, %5, %cst {dimension_numbers = #tpu.dot_dimension_numbers<[1], [1], [0], [0], [0, 0, 1, 0], [], []>} : vector<8x768xbf16>, vector<128x768xbf16>, vector<8x128xf32> -> vector<8x128xf32>
    %c0_4 = arith.constant 0 : index
    %c0_5 = arith.constant 0 : index
    %7 = vector.load %arg4[%c0_4, %c0_5] : memref<8x1xf32, #tpu.memory_space<vmem>>, vector<8x1xf32>
    %8 = vector.broadcast %7 : vector<8x1xf32> to vector<8x128xf32>
    %9 = arith.addf %6, %8 : vector<8x128xf32>
    %cst_6 = arith.constant 0.000000e+00 : f32
    %10 = vector.broadcast %cst_6 : f32 to vector<8x128xf32>
    %11 = arith.cmpf oge, %9, %10 : vector<8x128xf32>
    %cst_7 = arith.constant 0.00999999977 : f32
    %12 = vector.broadcast %cst_7 : f32 to vector<8x128xf32>
    %13 = arith.mulf %12, %9 : vector<8x128xf32>
    %14 = arith.select %11, %9, %13 : vector<8x128xi1>, vector<8x128xf32>
    %c0_8 = arith.constant 0 : index
    %c0_9 = arith.constant 0 : index
    %15 = vector.load %arg2[%c0_8, %c0_9] : memref<128x768xf32, #tpu.memory_space<vmem>>, vector<128x768xf32>
    %16 = arith.truncf %15 : vector<128x768xf32> to vector<128x768xbf16>
    %cst_10 = arith.constant dense<0.000000e+00> : vector<8x128xf32>
    %17 = tpu.matmul %3, %16, %cst_10 {dimension_numbers = #tpu.dot_dimension_numbers<[1], [1], [0], [0], [0, 0, 1, 0], [], []>} : vector<8x768xbf16>, vector<128x768xbf16>, vector<8x128xf32> -> vector<8x128xf32>
    %c0_11 = arith.constant 0 : index
    %c0_12 = arith.constant 0 : index
    %18 = vector.load %arg4[%c0_11, %c0_12] : memref<8x1xf32, #tpu.memory_space<vmem>>, vector<8x1xf32>
    %19 = vector.broadcast %18 : vector<8x1xf32> to vector<8x128xf32>
    %20 = arith.addf %17, %19 : vector<8x128xf32>
    %cst_13 = arith.constant 0.000000e+00 : f32
    %21 = vector.broadcast %cst_13 : f32 to vector<8x128xf32>
    %22 = arith.cmpf oge, %20, %21 : vector<8x128xf32>
    %cst_14 = arith.constant 0.00999999977 : f32
    %23 = vector.broadcast %cst_14 : f32 to vector<8x128xf32>
    %24 = arith.mulf %23, %20 : vector<8x128xf32>
    %25 = arith.select %22, %20, %24 : vector<8x128xi1>, vector<8x128xf32>
    %cst_15 = arith.constant 1.000000e+00 : f32
    %26 = vector.broadcast %cst_15 : f32 to vector<8x128xf32>
    %27 = arith.subf %26, %14 : vector<8x128xf32>
    %cst_16 = arith.constant 1.000000e+00 : f32
    %28 = vector.broadcast %cst_16 : f32 to vector<8x128xf32>
    %29 = arith.subf %28, %25 : vector<8x128xf32>
    %30 = arith.mulf %14, %25 : vector<8x128xf32>
    %31 = vector.broadcast %1 : f32 to vector<8x128xf32>
    %32 = arith.mulf %14, %31 : vector<8x128xf32>
    %33 = arith.addf %30, %32 : vector<8x128xf32>
    %34 = vector.broadcast %0 : f32 to vector<8x128xf32>
    %35 = arith.mulf %34, %25 : vector<8x128xf32>
    %36 = arith.addf %33, %35 : vector<8x128xf32>
    %37 = arith.mulf %27, %29 : vector<8x128xf32>
    %38 = vector.broadcast %1 : f32 to vector<8x128xf32>
    %39 = arith.mulf %27, %38 : vector<8x128xf32>
    %40 = arith.addf %37, %39 : vector<8x128xf32>
    %41 = vector.broadcast %0 : f32 to vector<8x128xf32>
    %42 = arith.mulf %41, %29 : vector<8x128xf32>
    %43 = arith.addf %40, %42 : vector<8x128xf32>
    %44 = arith.mulf %14, %29 : vector<8x128xf32>
    %45 = arith.mulf %27, %25 : vector<8x128xf32>
    %46 = arith.addf %44, %45 : vector<8x128xf32>
    %cst_17 = arith.constant 1.000000e+00 : f32
    %47 = vector.broadcast %cst_17 : f32 to vector<8x128xf32>
    %48 = arith.subf %47, %46 : vector<8x128xf32>
    %49 = tpu.reciprocal %48 : vector<8x128xf32> -> vector<8x128xf32>
    %50 = arith.mulf %36, %49 : vector<8x128xf32>
    %51 = arith.mulf %43, %49 : vector<8x128xf32>
    %52 = arith.subf %51, %50 : vector<8x128xf32>
    %53 = math.exp %52 : vector<8x128xf32>
    %cst_18 = arith.constant 1.000000e+00 : f32
    %54 = vector.broadcast %cst_18 : f32 to vector<8x128xf32>
    %55 = arith.addf %54, %53 : vector<8x128xf32>
    %56 = tpu.reciprocal %55 {approx = true} : vector<8x128xf32> -> vector<8x128xf32>
    %cst_19 = arith.constant 1.000000e+00 : f32
    %57 = vector.broadcast %cst_19 : f32 to vector<8x128xf32>
    %58 = arith.subf %57, %56 : vector<8x128xf32>
    %59 = vector.extract_strided_slice %56 {offsets = [0, 0], sizes = [2, 128], strides = [1, 1]} : vector<8x128xf32> to vector<2x128xf32>
    %c0_20 = arith.constant 0 : index
    %c0_21 = arith.constant 0 : index
    %60 = vector.load %arg6[%c0_20, %c0_21] : memref<8x128xf32, #tpu.memory_space<vmem>>, vector<2x128xf32>
    tpu.vector_store %arg6[%c0_20, %c0_21], %59 {strides = array<i32>} : memref<8x128xf32, #tpu.memory_space<vmem>>, vector<2x128xf32>,
    %61 = vector.extract_strided_slice %58 {offsets = [0, 0], sizes = [2, 128], strides = [1, 1]} : vector<8x128xf32> to vector<2x128xf32>
    %c2 = arith.constant 2 : index
    %c0_22 = arith.constant 0 : index
    %62 = vector.load %arg6[%c2, %c0_22] : memref<8x128xf32, #tpu.memory_space<vmem>>, vector<2x128xf32>
    tpu.vector_store %arg6[%c2, %c0_22], %61 {strides = array<i32>} : memref<8x128xf32, #tpu.memory_space<vmem>>, vector<2x128xf32>,
    %63 = vector.extract_strided_slice %50 {offsets = [0, 0], sizes = [2, 128], strides = [1, 1]} : vector<8x128xf32> to vector<2x128xf32>
    %c4 = arith.constant 4 : index
    %c0_23 = arith.constant 0 : index
    %64 = vector.load %arg6[%c4, %c0_23] : memref<8x128xf32, #tpu.memory_space<vmem>>, vector<2x128xf32>
    tpu.vector_store %arg6[%c4, %c0_23], %63 {strides = array<i32>} : memref<8x128xf32, #tpu.memory_space<vmem>>, vector<2x128xf32>,
    %65 = vector.extract_strided_slice %51 {offsets = [0, 0], sizes = [2, 128], strides = [1, 1]} : vector<8x128xf32> to vector<2x128xf32>
    %c6 = arith.constant 6 : index
    %c0_24 = arith.constant 0 : index
    %66 = vector.load %arg6[%c6, %c0_24] : memref<8x128xf32, #tpu.memory_space<vmem>>, vector<2x128xf32>
    tpu.vector_store %arg6[%c6, %c0_24], %65 {strides = array<i32>} : memref<8x128xf32, #tpu.memory_space<vmem>>, vector<2x128xf32>,
    return
  }
  func.func @transform_0(%arg0: i32) -> (i32, i32) {
    %c0_i32 = arith.constant 0 : i32
    %c0_i32_0 = arith.constant 0 : i32
    return %arg0, %c0_i32 : i32, i32
  }
  func.func @transform_1(%arg0: i32) -> (i32, i32) {
    %c0_i32 = arith.constant 0 : i32
    %c0_i32_0 = arith.constant 0 : i32
    return %arg0, %c0_i32 : i32, i32
  }
  func.func @transform_2(%arg0: i32) -> (i32, i32) {
    %c0_i32 = arith.constant 0 : i32
    %c0_i32_0 = arith.constant 0 : i32
    %c0_i32_1 = arith.constant 0 : i32
    return %c0_i32, %c0_i32_0 : i32, i32
  }
  func.func @transform_3(%arg0: i32) -> (i32, i32) {
    %c0_i32 = arith.constant 0 : i32
    %c0_i32_0 = arith.constant 0 : i32
    %c0_i32_1 = arith.constant 0 : i32
    return %c0_i32, %c0_i32_0 : i32, i32
  }
  func.func @transform_4(%arg0: i32) -> i32 {
    %c0_i32 = arith.constant 0 : i32
    %c0_i32_0 = arith.constant 0 : i32
    return %c0_i32 : i32
  }
  func.func @transform_5(%arg0: i32) -> (i32, i32) {
    %c0_i32 = arith.constant 0 : i32
    %c0_i32_0 = arith.constant 0 : i32
    return %c0_i32, %arg0 : i32, i32
  }
}

</mosaic_0001>

<bundles_post_ra>
// kernel: tpu_custom_call.1
= control target key start
LH: loop header
LB: loop body
LE: loop exit
PB: predicated region body
PF: predicated region fallthrough
CT: control target
= control target key end

     0   :  { %10 = vsyncpa [#allocation3], 0  ;;  %s917_s0 = inlined_call_operand.hbm [shape: f32[128,768], index: 0, kind: input, shape index: {}]   ;;  %s918_s1 = inlined_call_operand.hbm [shape: f32[128,768], index: 1, kind: input, shape index: {}]   ;;  %s919_s2 = inlined_call_operand.hbm [shape: f32[8,768], index: 2, kind: input, shape index: {}]   ;;  %s920_s3 = inlined_call_operand.vmem [shape: f32[8,1], index: 3, kind: input, shape index: {}]   ;;  %s921_s4 = inlined_call_operand.vmem [shape: f32[2], index: 4, kind: input, shape index: {}]   ;;  %s922_s5 = inlined_call_operand.hbm [shape: f32[8,128], index: 5, kind: output, shape index: {}]  }
   0x1   :  { %11 = vsyncpa [#allocation7], 0 }
   0x2   :  { %12 = vsyncpa [#allocation5], 0 }
   0x3   :  { %13 = vsyncpa [#allocation4], 0  ;;  %s818_s18 = smov [#allocation6]   ;;  %s819_s20 = smov [#allocation2]  }
   0x4   :  { %s31_s19 = sshll.u32 %s818_s18, 4  ;;  %s19_s21 = sshll.u32 %s819_s20, 4  ;;  %s32_s19 = int_to_ptr.vmem [resolvable:$true] %s31_s19  ;;  %s856_s21 = int_to_ptr.vmem [resolvable:$true] %s19_s21 }
   0x5   :  { %s710_s24 = scalar_lea.hbm %s918_s1, 12288 }
   0x6   :  { %p711_p0 = scmp.ne.s32.totalorder %s918_s1, %s710_s24  ;;  %p714_p1 = scmp.lt.u32.totalorder %s710_s24, %s918_s1 }
   0x8   :  { %p716_p2 = pnand %p714_p1, %p711_p0 }
   0xa   :  { %719 = shalt.err (!%p716_p2)
}
   0xb   :  { %s720_s29 = scalar_lea.vmem %s32_s19, 12288  ;;  %p725_p4 = scmp.lt.s32.totalorder %s32_s19, %s32_s19 }
   0xc   :  { %p721_p3 = scmp.ne.s32.totalorder %s32_s19, %s720_s29  ;;  %p726_p5 = scmp.lt.s32.totalorder %s720_s29, %s720_s29 }
   0xe   :  { %p727_p6 = por %p726_p5, %p725_p4 }
  0x10   :  { %p728_p7 = pnand %p727_p6, %p721_p3 }
  0x12   :  { %731 = shalt.err (!%p728_p7)
}
  0x13   :  { %s820_s30 = smov 768   ;;  %s821_s6 = smov 48  }
  0x14   :  { %37 = dma.hbm_to_vmem [thread:$0]  %s918_s1, 12288, %s32_s19, [#allocation7], %s820_s30, %s820_s30, %s821_s6  }
  0x15   :  { %s732_s11 = scalar_lea.hbm %s917_s0, 12288 }
  0x16   :  { %p733_p8 = scmp.ne.s32.totalorder %s917_s0, %s732_s11  ;;  %p736_p9 = scmp.lt.u32.totalorder %s732_s11, %s917_s0 }
  0x18   :  { %p738_p10 = pnand %p736_p9, %p733_p8 }
  0x1a   :  { %741 = shalt.err (!%p738_p10)
}
  0x1b   :  { %s742_s16 = scalar_lea.vmem %s856_s21, 12288  ;;  %p747_p12 = scmp.lt.s32.totalorder %s856_s21, %s856_s21 }
  0x1c   :  { %p743_p11 = scmp.ne.s32.totalorder %s856_s21, %s742_s16  ;;  %p748_p13 = scmp.lt.s32.totalorder %s742_s16, %s742_s16 }
  0x1e   :  { %p749_p0 = por %p748_p13, %p747_p12 }
  0x20   :  { %p750_p1 = pnand %p749_p0, %p743_p11 }
  0x22   :  { %753 = shalt.err (!%p750_p1)
}
  0x23   :  { %25 = dma.hbm_to_vmem [thread:$0]  %s917_s0, 12288, %s856_s21, [#allocation3], %s820_s30, %s820_s30, %s821_s6  }
  0x24   :  { %s56_s20 = sshll.u32 %s921_s4, 4  ;;  %s822_s22 = smov [#allocation8]   ;;  %s57_s20 = int_to_ptr.vmem [resolvable:$true] %s56_s20 }
  0x25   :  { %s44_s23 = sshll.u32 %s822_s22, 4  ;;  %s754_s26 = scalar_lea.hbm %s919_s2, 768  ;;  %s45_s23 = int_to_ptr.vmem [resolvable:$true] %s44_s23 }
  0x26   :  { %p755_p2 = scmp.ne.s32.totalorder %s919_s2, %s754_s26  ;;  %p758_p3 = scmp.lt.u32.totalorder %s754_s26, %s919_s2 }
  0x28   :  { %p760_p4 = pnand %p758_p3, %p755_p2 }
  0x2a   :  { %763 = shalt.err (!%p760_p4)
}
  0x2b   :  { %s764_s0 = scalar_lea.vmem %s45_s23, 768  ;;  %p769_p6 = scmp.lt.s32.totalorder %s45_s23, %s45_s23 }
  0x2c   :  { %p765_p5 = scmp.ne.s32.totalorder %s45_s23, %s764_s0  ;;  %p770_p7 = scmp.lt.s32.totalorder %s764_s0, %s764_s0 }
  0x2e   :  { %p771_p8 = por %p770_p7, %p769_p6 }
  0x30   :  { %p772_p9 = pnand %p771_p8, %p765_p5 }
  0x32   :  { %775 = shalt.err (!%p772_p9)
}
  0x33   :  { %47 = dma.hbm_to_vmem [thread:$0]  %s919_s2, 768, %s45_s23, [#allocation7]  }
  0x34   :  { %s776_s30 = scalar_lea.vmem %s57_s20, 16  ;;  %p781_p11 = scmp.lt.s32.totalorder %s57_s20, %s57_s20 }
  0x35   :  { %p777_p10 = scmp.ne.s32.totalorder %s57_s20, %s776_s30  ;;  %p782_p12 = scmp.lt.s32.totalorder %s776_s30, %s776_s30 }
  0x37   :  { %p783_p13 = por %p782_p12, %p781_p11 }
  0x39   :  { %p784_p0 = pnand %p783_p13, %p777_p10 }
  0x3b   :  { %787 = shalt.err (!%p784_p0)
}
  0x3c   :  { %s823_s6 = smov [#allocation9]  }
  0x3d   :  { %59 = dma.vmem_to_smem %s57_s20, 16, %s823_s6, [#allocation5]  }
  0x3e   :  { %810 = dma.done.wait [#allocation3], 12288  }
  0x3f   :  { %811 = vsyncadd [#allocation3], 4294955008 }
  0x40   :  { %812 = dma.done.wait [#allocation7], 13056  }
  0x41   :  { %813 = vsyncadd [#allocation7], 4294954240 }
  0x42   :  { %814 = dma.done.wait [#allocation5], 16  }
  0x43   :  { %815 = vsyncadd [#allocation5], 4294967280 }
  0x44   :  { %72 = sfence }
  0x45   :  { %v89_v0 = vld [vmem:[#allocation2 + $0x8] sm:$0xff]  ;;  %v95_v1 = vld [vmem:[#allocation2 + $0x38] sm:$0xff]  ;;  %v88_v5 = vld [vmem:[#allocation2] sm:$0xff]  ;;  %s74_s9 = sld [smem:[#allocation9]]  ;;  %s825_s10 = smov [#allocation10]  }
  0x46   :  { %v362_v2 = vld [vmem:[#allocation6 + $0x8] sm:$0xff]  ;;  %v185_v3 = vpack.c.bf16 %v95_v1, %v89_v0  ;;  %v368_v4 = vld [vmem:[#allocation6 + $0x38] sm:$0xff]  ;;  %v94_v6 = vld [vmem:[#allocation2 + $0x30] sm:$0xff]  ;;  %s665_s11 = sshll.u32 %s825_s10, 4  ;;  %s666_s11 = int_to_ptr.vmem [resolvable:$true] %s665_s11 }
  0x47   :  { %v458_v7 = vpack.c.bf16 %v368_v4, %v362_v2  ;;  %v184_v8 = vpack.c.bf16 %v94_v6, %v88_v5  ;;  %v361_v9 = vld [vmem:[#allocation6] sm:$0xff]  ;;  %v367_v10 = vld [vmem:[#allocation6 + $0x30] sm:$0xff]  ;;  %v101_v11 = vld [vmem:[#allocation2 + $0x68] sm:$0xff]  ;;  %s788_s12 = scalar_lea.vmem %s666_s11, 128  ;;  %p793_p2 = scmp.lt.s32.totalorder %s666_s11, %s666_s11 }
  0x48   :  { %238 = vmatprep.subr.bf16.mxu0 %v185_v3  ;;  %v457_v12 = vpack.c.bf16 %v367_v10, %v361_v9  ;;  %v107_v13 = vld [vmem:[#allocation2 + $0x98] sm:$0xff]  ;;  %v374_v14 = vld [vmem:[#allocation6 + $0x68] sm:$0xff]  ;;  %v100_v18 = vld [vmem:[#allocation2 + $0x60] sm:$0xff]  ;;  %p789_p1 = scmp.ne.s32.totalorder %s666_s11, %s788_s12  ;;  %p794_p3 = scmp.lt.s32.totalorder %s788_s12, %s788_s12 }
  0x49   :  { %v380_v15 = vld [vmem:[#allocation6 + $0x98] sm:$0xff]  ;;  %505 = vmatprep.subr.bf16.mxu1 %v458_v7  ;;  %239 = vmatpush1.bf16.xpose.msra.mxu0 %v184_v8  ;;  %v191_v16 = vpack.c.bf16 %v107_v13, %v101_v11  ;;  %v106_v19 = vld [vmem:[#allocation2 + $0x90] sm:$0xff]  ;;  %v373_v20 = vld [vmem:[#allocation6 + $0x60] sm:$0xff] }
  0x4a   :  { %v464_v17 = vpack.c.bf16 %v380_v15, %v374_v14  ;;  %506 = vmatpush1.bf16.xpose.msra.mxu1 %v457_v12  ;;  %v379_v21 = vld [vmem:[#allocation6 + $0x90] sm:$0xff]  ;;  %v113_v22 = vld [vmem:[#allocation2 + $0xc8] sm:$0xff]  ;;  %v119_v23 = vld [vmem:[#allocation2 + $0xf8] sm:$0xff]  ;;  %v190_v26 = vpack.c.bf16 %v106_v19, %v100_v18  ;;  %p795_p4 = por %p794_p3, %p793_p2 }
  0x4b   :  { %240 = vmatprep.subr.bf16.mxu0 %v191_v16  ;;  %v386_v24 = vld [vmem:[#allocation6 + $0xc8] sm:$0xff]  ;;  %v392_v25 = vld [vmem:[#allocation6 + $0xf8] sm:$0xff]  ;;  %v463_v27 = vpack.c.bf16 %v379_v21, %v373_v20  ;;  %v197_v28 = vpack.c.bf16 %v119_v23, %v113_v22  ;;  %v112_v30 = vld [vmem:[#allocation2 + $0xc0] sm:$0xff] }
  0x4c   :  { %507 = vmatprep.subr.bf16.mxu1 %v464_v17  ;;  %v470_v29 = vpack.c.bf16 %v392_v25, %v386_v24  ;;  %v118_v31 = vld [vmem:[#allocation2 + $0xf0] sm:$0xff]  ;;  %v385_v32 = vld [vmem:[#allocation6 + $0xc0] sm:$0xff]  ;;  %v125_v34 = vld [vmem:[#allocation2 + $0x128] sm:$0xff]  ;;  %p796_p5 = pnand %p795_p4, %p789_p1 }
  0x4d   :  { %v391_v33 = vld [vmem:[#allocation6 + $0xf0] sm:$0xff]  ;;  %v131_v35 = vld [vmem:[#allocation2 + $0x158] sm:$0xff]  ;;  %v398_v36 = vld [vmem:[#allocation6 + $0x128] sm:$0xff]  ;;  %v196_v38 = vpack.c.bf16 %v118_v31, %v112_v30 }
  0x4e   :  { %v404_v37 = vld [vmem:[#allocation6 + $0x158] sm:$0xff]  ;;  %v469_v39 = vpack.c.bf16 %v391_v33, %v385_v32  ;;  %v203_v40 = vpack.c.bf16 %v131_v35, %v125_v34  ;;  %v124_v42 = vld [vmem:[#allocation2 + $0x120] sm:$0xff]  ;;  %v130_v43 = vld [vmem:[#allocation2 + $0x150] sm:$0xff] }
  0x4f   :  { %v476_v41 = vpack.c.bf16 %v404_v37, %v398_v36  ;;  %v397_v44 = vld [vmem:[#allocation6 + $0x120] sm:$0xff]  ;;  %v77_v45 = vld [vmem:[#allocation8 + $0x8] sm:$0xff]  ;;  %v403_v46 = vld [vmem:[#allocation6 + $0x150] sm:$0xff]  ;;  %v202_v52 = vpack.c.bf16 %v130_v43, %v124_v42 }
  0x50   :  { %v137_v47 = vld [vmem:[#allocation2 + $0x188] sm:$0xff]  ;;  %v143_v48 = vld [vmem:[#allocation2 + $0x1b8] sm:$0xff]  ;;  %v83_v49 = vpack.c.bf16 %v77_v45, %v77_v45  ;;  %v475_v53 = vpack.c.bf16 %v403_v46, %v397_v44  ;;  %v136_v56 = vld [vmem:[#allocation2 + $0x180] sm:$0xff] }
  0x51   :  { %241 = vmatpush1.bf16.xpose.msra.mxu0 %v190_v26  ;;  %v410_v50 = vld [vmem:[#allocation6 + $0x188] sm:$0xff]  ;;  %v416_v51 = vld [vmem:[#allocation6 + $0x1b8] sm:$0xff]  ;;  %v209_v54 = vpack.c.bf16 %v143_v48, %v137_v47  ;;  %v142_v57 = vld [vmem:[#allocation2 + $0x1b0] sm:$0xff] }
  0x52   :  { %508 = vmatpush1.bf16.xpose.msra.mxu1 %v463_v27  ;;  %242 = vmatprep.subr.bf16.mxu0 %v197_v28  ;;  %v482_v55 = vpack.c.bf16 %v416_v51, %v410_v50  ;;  %v409_v58 = vld [vmem:[#allocation6 + $0x180] sm:$0xff]  ;;  %v415_v59 = vld [vmem:[#allocation6 + $0x1b0] sm:$0xff]  ;;  %v149_v60 = vld [vmem:[#allocation2 + $0x1e8] sm:$0xff]  ;;  %v208_v0 = vpack.c.bf16 %v142_v57, %v136_v56 }
  0x53   :  { %509 = vmatprep.subr.bf16.mxu1 %v470_v29  ;;  %270 = vmatprep.mubr.bf16.mxu0 %v83_v49  ;;  %v155_v61 = vld [vmem:[#allocation2 + $0x218] sm:$0xff]  ;;  %v422_v62 = vld [vmem:[#allocation6 + $0x1e8] sm:$0xff]  ;;  %v481_v1 = vpack.c.bf16 %v415_v59, %v409_v58  ;;  %v148_v4 = vld [vmem:[#allocation2 + $0x1e0] sm:$0xff] }
  0x54   :  { %537 = vmatprep.mubr.bf16.mxu1 %v83_v49  ;;  %v428_v63 = vld [vmem:[#allocation6 + $0x218] sm:$0xff]  ;;  %v215_v2 = vpack.c.bf16 %v155_v61, %v149_v60  ;;  %v154_v5 = vld [vmem:[#allocation2 + $0x210] sm:$0xff]  ;;  %v421_v6 = vld [vmem:[#allocation6 + $0x1e0] sm:$0xff] }
  0x55   :  { %v488_v3 = vpack.c.bf16 %v428_v63, %v422_v62  ;;  %v427_v7 = vld [vmem:[#allocation6 + $0x210] sm:$0xff]  ;;  %v161_v8 = vld [vmem:[#allocation2 + $0x248] sm:$0xff]  ;;  %v167_v9 = vld [vmem:[#allocation2 + $0x278] sm:$0xff]  ;;  %v214_v12 = vpack.c.bf16 %v154_v5, %v148_v4 }
  0x56   :  { %v434_v10 = vld [vmem:[#allocation6 + $0x248] sm:$0xff]  ;;  %v440_v11 = vld [vmem:[#allocation6 + $0x278] sm:$0xff]  ;;  %v487_v13 = vpack.c.bf16 %v427_v7, %v421_v6  ;;  %v221_v14 = vpack.c.bf16 %v167_v9, %v161_v8  ;;  %v160_v16 = vld [vmem:[#allocation2 + $0x240] sm:$0xff] }
  0x57   :  { %v494_v15 = vpack.c.bf16 %v440_v11, %v434_v10  ;;  %v166_v17 = vld [vmem:[#allocation2 + $0x270] sm:$0xff]  ;;  %v433_v18 = vld [vmem:[#allocation6 + $0x240] sm:$0xff]  ;;  %v173_v20 = vld [vmem:[#allocation2 + $0x2a8] sm:$0xff] }
  0x58   :  { %v439_v19 = vld [vmem:[#allocation6 + $0x270] sm:$0xff]  ;;  %v179_v21 = vld [vmem:[#allocation2 + $0x2d8] sm:$0xff]  ;;  %v446_v22 = vld [vmem:[#allocation6 + $0x2a8] sm:$0xff]  ;;  %v220_v24 = vpack.c.bf16 %v166_v17, %v160_v16 }
  0x59   :  { %243 = vmatpush1.bf16.xpose.msra.mxu0 %v196_v38  ;;  %v452_v23 = vld [vmem:[#allocation6 + $0x2d8] sm:$0xff]  ;;  %v493_v25 = vpack.c.bf16 %v439_v19, %v433_v18  ;;  %v227_v26 = vpack.c.bf16 %v179_v21, %v173_v20  ;;  %v172_v28 = vld [vmem:[#allocation2 + $0x2a0] sm:$0xff]  ;;  %v178_v29 = vld [vmem:[#allocation2 + $0x2d0] sm:$0xff] }
  0x5a   :  { %510 = vmatpush1.bf16.xpose.msra.mxu1 %v469_v39  ;;  %244 = vmatprep.subr.bf16.mxu0 %v203_v40  ;;  %v500_v27 = vpack.c.bf16 %v452_v23, %v446_v22  ;;  %v445_v30 = vld [vmem:[#allocation6 + $0x2a0] sm:$0xff]  ;;  %v451_v31 = vld [vmem:[#allocation6 + $0x2d0] sm:$0xff]  ;;  %v91_v32 = vld [vmem:[#allocation2 + $0x18] sm:$0xff]  ;;  %v226_v36 = vpack.c.bf16 %v178_v29, %v172_v28 }
  0x5b   :  { %511 = vmatprep.subr.bf16.mxu1 %v476_v41  ;;  %v97_v33 = vld [vmem:[#allocation2 + $0x48] sm:$0xff]  ;;  %v364_v34 = vld [vmem:[#allocation6 + $0x18] sm:$0xff]  ;;  %v499_v37 = vpack.c.bf16 %v451_v31, %v445_v30  ;;  %v76_v40 = vld [vmem:[#allocation8] sm:$0xff] }
  0x5c   :  { %v370_v35 = vld [vmem:[#allocation6 + $0x48] sm:$0xff]  ;;  %v187_v38 = vpack.c.bf16 %v97_v33, %v91_v32  ;;  %v90_v41 = vld [vmem:[#allocation2 + $0x10] sm:$0xff]  ;;  %v96_v42 = vld [vmem:[#allocation2 + $0x40] sm:$0xff]  ;;  %v82_v47 = vpack.c.bf16 %v76_v40, %v76_v40 }
  0x5d   :  { %v460_v39 = vpack.c.bf16 %v370_v35, %v364_v34  ;;  %v363_v43 = vld [vmem:[#allocation6 + $0x10] sm:$0xff]  ;;  %v369_v44 = vld [vmem:[#allocation6 + $0x40] sm:$0xff]  ;;  %v103_v45 = vld [vmem:[#allocation2 + $0x78] sm:$0xff]  ;;  %v186_v51 = vpack.c.bf16 %v96_v42, %v90_v41 }
  0x5e   :  { %v109_v46 = vld [vmem:[#allocation2 + $0xa8] sm:$0xff]  ;;  %v376_v48 = vld [vmem:[#allocation6 + $0x78] sm:$0xff]  ;;  %v102_v56 = vld [vmem:[#allocation2 + $0x70] sm:$0xff] }
  0x5f   :  { %v382_v49 = vld [vmem:[#allocation6 + $0xa8] sm:$0xff]  ;;  %v79_v50 = vld [vmem:[#allocation8 + $0x18] sm:$0xff]  ;;  %v108_v57 = vld [vmem:[#allocation2 + $0xa0] sm:$0xff] }
  0x60   :  { %v375_v58 = vld [vmem:[#allocation6 + $0x70] sm:$0xff]  ;;  %v232_v59 = vld [vmem:[%s920_s3] sm:$0xff]  ;;  %v115_v61 = vld [vmem:[#allocation2 + $0xd8] sm:$0xff]  ;;  %s676_s3 = sld [smem:[#allocation9 + $0x1]] }
  0x61   :  { %245 = vmatpush1.bf16.xpose.msra.mxu0 %v202_v52  ;;  %v459_v52 = vpack.c.bf16 %v369_v44, %v363_v43  ;;  %v381_v60 = vld [vmem:[#allocation6 + $0xa0] sm:$0xff]  ;;  %v121_v62 = vld [vmem:[#allocation2 + $0x108] sm:$0xff]  ;;  %v388_v63 = vld [vmem:[#allocation6 + $0xd8] sm:$0xff] }
  0x62   :  { %512 = vmatpush1.bf16.xpose.msra.mxu1 %v475_v53  ;;  %246 = vmatprep.subr.bf16.mxu0 %v209_v54  ;;  %v193_v53 = vpack.c.bf16 %v109_v46, %v103_v45  ;;  %v466_v54 = vpack.c.bf16 %v382_v49, %v376_v48  ;;  %v199_v4 = vpack.c.bf16 %v121_v62, %v115_v61  ;;  %v114_v6 = vld [vmem:[#allocation2 + $0xd0] sm:$0xff]  ;;  %v120_v7 = vld [vmem:[#allocation2 + $0x100] sm:$0xff]  ;;  %v127_v10 = vld [vmem:[#allocation2 + $0x138] sm:$0xff] }
  0x63   :  { %513 = vmatprep.subr.bf16.mxu1 %v482_v55  ;;  %v85_v55 = vpack.c.bf16 %v79_v50, %v79_v50  ;;  %v387_v8 = vld [vmem:[#allocation6 + $0xd0] sm:$0xff]  ;;  %v393_v9 = vld [vmem:[#allocation6 + $0x100] sm:$0xff]  ;;  %v133_v11 = vld [vmem:[#allocation2 + $0x168] sm:$0xff] }
  0x64   :  { %v205_v16 = vpack.c.bf16 %v133_v11, %v127_v10  ;;  %v126_v18 = vld [vmem:[#allocation2 + $0x130] sm:$0xff]  ;;  %v132_v19 = vld [vmem:[#allocation2 + $0x160] sm:$0xff]  ;;  %v139_v22 = vld [vmem:[#allocation2 + $0x198] sm:$0xff] }
  0x65   :  { %v399_v20 = vld [vmem:[#allocation6 + $0x130] sm:$0xff]  ;;  %v405_v21 = vld [vmem:[#allocation6 + $0x160] sm:$0xff]  ;;  %v145_v23 = vld [vmem:[#allocation2 + $0x1c8] sm:$0xff] }
  0x66   :  { %v211_v28 = vpack.c.bf16 %v145_v23, %v139_v22  ;;  %v138_v30 = vld [vmem:[#allocation2 + $0x190] sm:$0xff]  ;;  %v144_v31 = vld [vmem:[#allocation2 + $0x1c0] sm:$0xff]  ;;  %v151_v34 = vld [vmem:[#allocation2 + $0x1f8] sm:$0xff] }
  0x67   :  { %v411_v32 = vld [vmem:[#allocation6 + $0x190] sm:$0xff]  ;;  %v417_v33 = vld [vmem:[#allocation6 + $0x1c0] sm:$0xff]  ;;  %v157_v35 = vld [vmem:[#allocation2 + $0x228] sm:$0xff] }
  0x68   :  { %v217_v40 = vpack.c.bf16 %v157_v35, %v151_v34  ;;  %v150_v42 = vld [vmem:[#allocation2 + $0x1f0] sm:$0xff]  ;;  %v156_v43 = vld [vmem:[#allocation2 + $0x220] sm:$0xff]  ;;  %v163_v46 = vld [vmem:[#allocation2 + $0x258] sm:$0xff] }
  0x69   :  { %247 = vmatpush1.bf16.xpose.msra.mxu0 %v208_v0  ;;  %v394_v0 = vld [vmem:[#allocation6 + $0x108] sm:$0xff]  ;;  %v423_v44 = vld [vmem:[#allocation6 + $0x1f0] sm:$0xff]  ;;  %v429_v45 = vld [vmem:[#allocation6 + $0x220] sm:$0xff]  ;;  %v216_v50 = vpack.c.bf16 %v156_v43, %v150_v42 }
  0x6a   :  { %514 = vmatpush1.bf16.xpose.msra.mxu1 %v481_v1  ;;  %248 = vmatprep.subr.bf16.mxu0 %v215_v2  ;;  %v824_v1 = vmov 0   ;;  %v192_v2 = vpack.c.bf16 %v108_v57, %v102_v56  ;;  %v472_v5 = vpack.c.bf16 %v394_v0, %v388_v63  ;;  %v436_v48 = vld [vmem:[#allocation6 + $0x258] sm:$0xff]  ;;  %v442_v49 = vld [vmem:[#allocation6 + $0x288] sm:$0xff]  ;;  %v435_v56 = vld [vmem:[#allocation6 + $0x250] sm:$0xff] }
  0x6b   :  { %515 = vmatprep.subr.bf16.mxu1 %v488_v3  ;;  %703 = vset.pattern.permute.xlu0 %v824_v1  ;;  %v465_v3 = vpack.c.bf16 %v381_v60, %v375_v58  ;;  %v441_v57 = vld [vmem:[#allocation6 + $0x280] sm:$0xff]  ;;  %v175_v58 = vld [vmem:[#allocation2 + $0x2b8] sm:$0xff]  ;;  %v454_v61 = vld [vmem:[#allocation6 + $0x2e8] sm:$0xff] }
  0x6c   :  { %235 = vperm.xlu0 %703, %v232_v59   ;;  %v181_v59 = vld [vmem:[#allocation2 + $0x2e8] sm:$0xff]  ;;  %v448_v60 = vld [vmem:[#allocation6 + $0x2b8] sm:$0xff]  ;;  %v495_v63 = vpack.c.bf16 %v441_v57, %v435_v56  ;;  %v116_v42 = vld [vmem:[#allocation2 + $0xe0] sm:$0xff] }
  0x6d   :  { %v229_v0 = vpack.c.bf16 %v181_v59, %v175_v58  ;;  %v502_v1 = vpack.c.bf16 %v454_v61, %v448_v60  ;;  %v378_v22 = vld [vmem:[#allocation6 + $0x88] sm:$0xff]  ;;  %v384_v23 = vld [vmem:[#allocation6 + $0xb8] sm:$0xff]  ;;  %v122_v43 = vld [vmem:[#allocation2 + $0x110] sm:$0xff] }
  0x6e   :  { %v117_v34 = vld [vmem:[#allocation2 + $0xe8] sm:$0xff]  ;;  %v123_v35 = vld [vmem:[#allocation2 + $0x118] sm:$0xff]  ;;  %v401_v56 = vld [vmem:[#allocation6 + $0x140] sm:$0xff] }
  0x6f   :  { %v407_v57 = vld [vmem:[#allocation6 + $0x170] sm:$0xff]  ;;  %v141_v58 = vld [vmem:[#allocation2 + $0x1a8] sm:$0xff]  ;;  %v147_v59 = vld [vmem:[#allocation2 + $0x1d8] sm:$0xff] }
  0x70   :  { %v414_v60 = vld [vmem:[#allocation6 + $0x1a8] sm:$0xff]  ;;  %v420_v61 = vld [vmem:[#allocation6 + $0x1d8] sm:$0xff] }
  0x71   :  { %249 = vmatpush1.bf16.xpose.msra.mxu0 %v214_v12  ;;  %v400_v12 = vld [vmem:[#allocation6 + $0x138] sm:$0xff] }
  0x72   :  { %516 = vmatpush1.bf16.xpose.msra.mxu1 %v487_v13  ;;  %250 = vmatprep.subr.bf16.mxu0 %v221_v14  ;;  %v406_v13 = vld [vmem:[#allocation6 + $0x168] sm:$0xff]  ;;  %v198_v14 = vpack.c.bf16 %v120_v7, %v114_v6  ;;  %v99_v7 = vld [vmem:[#allocation2 + $0x58] sm:$0xff] }
  0x73   :  { %517 = vmatprep.subr.bf16.mxu1 %v494_v15  ;;  %v471_v15 = vpack.c.bf16 %v393_v9, %v387_v8  ;;  %v478_v17 = vpack.c.bf16 %v406_v13, %v400_v12  ;;  %v93_v6 = vld [vmem:[#allocation2 + $0x28] sm:$0xff]  ;;  %v372_v9 = vld [vmem:[#allocation6 + $0x58] sm:$0xff] }
  0x74   :  { %v366_v8 = vld [vmem:[#allocation6 + $0x28] sm:$0xff]  ;;  %v189_v12 = vpack.c.bf16 %v99_v7, %v93_v6  ;;  %v159_v7 = vld [vmem:[#allocation2 + $0x238] sm:$0xff] }
  0x75   :  { %v462_v13 = vpack.c.bf16 %v372_v9, %v366_v8  ;;  %v153_v6 = vld [vmem:[#allocation2 + $0x208] sm:$0xff]  ;;  %v432_v9 = vld [vmem:[#allocation6 + $0x238] sm:$0xff] }
  0x76   :  { %v426_v8 = vld [vmem:[#allocation6 + $0x208] sm:$0xff] }
  0x79   :  { %251 = vmatpush1.bf16.xpose.msra.mxu0 %v220_v24  ;;  %v412_v24 = vld [vmem:[#allocation6 + $0x198] sm:$0xff] }
  0x7a   :  { %518 = vmatpush1.bf16.xpose.msra.mxu1 %v493_v25  ;;  %252 = vmatprep.subr.bf16.mxu0 %v227_v26  ;;  %v418_v25 = vld [vmem:[#allocation6 + $0x1c8] sm:$0xff]  ;;  %v204_v26 = vpack.c.bf16 %v132_v19, %v126_v18  ;;  %v371_v18 = vld [vmem:[#allocation6 + $0x50] sm:$0xff] }
  0x7b   :  { %519 = vmatprep.subr.bf16.mxu1 %v500_v27  ;;  %v477_v27 = vpack.c.bf16 %v405_v21, %v399_v20  ;;  %v484_v29 = vpack.c.bf16 %v418_v25, %v412_v24  ;;  %v105_v19 = vld [vmem:[#allocation2 + $0x88] sm:$0xff]  ;;  %v111_v20 = vld [vmem:[#allocation2 + $0xb8] sm:$0xff] }
  0x7c   :  { %v81_v24 = vld [vmem:[#allocation8 + $0x28] sm:$0xff] }
  0x81   :  { %253 = vmatpush1.bf16.xpose.msra.mxu0 %v226_v36  ;;  %v424_v36 = vld [vmem:[#allocation6 + $0x1f8] sm:$0xff] }
  0x82   :  { %520 = vmatpush1.bf16.xpose.msra.mxu1 %v499_v37  ;;  %278 = vmatprep.subr.bf16.mxu0 %v187_v38  ;;  %v430_v37 = vld [vmem:[#allocation6 + $0x228] sm:$0xff]  ;;  %v210_v38 = vpack.c.bf16 %v144_v31, %v138_v30  ;;  %v104_v30 = vld [vmem:[#allocation2 + $0x80] sm:$0xff]  ;;  %v110_v31 = vld [vmem:[#allocation2 + $0xb0] sm:$0xff] }
  0x83   :  { %545 = vmatprep.subr.bf16.mxu1 %v460_v39  ;;  %v483_v39 = vpack.c.bf16 %v417_v33, %v411_v32  ;;  %v490_v41 = vpack.c.bf16 %v430_v37, %v424_v36  ;;  %v377_v32 = vld [vmem:[#allocation6 + $0x80] sm:$0xff]  ;;  %v383_v33 = vld [vmem:[#allocation6 + $0xb0] sm:$0xff]  ;;  %v390_v36 = vld [vmem:[#allocation6 + $0xe8] sm:$0xff] }
  0x84   :  { %v396_v37 = vld [vmem:[#allocation6 + $0x118] sm:$0xff] }
  0x88   :  { %271 = vmatmul.mubr.bf16.vlgmr.msra.gmra.mrb[0].mxu0 %v82_v47 }
  0x89   :  { %279 = vmatpush1.bf16.xpose.msra.mxu0 %v186_v51  ;;  %538 = vmatmul.mubr.bf16.vlgmr.msra.gmra.mrb[0].mxu1 %v82_v47  ;;  %v169_v47 = vld [vmem:[#allocation2 + $0x288] sm:$0xff]  ;;  %v489_v51 = vpack.c.bf16 %v429_v45, %v423_v44  ;;  %v389_v44 = vld [vmem:[#allocation6 + $0xe0] sm:$0xff]  ;;  %v395_v45 = vld [vmem:[#allocation6 + $0x110] sm:$0xff] }
  0x8a   :  { %546 = vmatpush1.bf16.xpose.msra.mxu1 %v459_v52  ;;  %280 = vmatprep.subr.bf16.mxu0 %v193_v53  ;;  %v223_v52 = vpack.c.bf16 %v169_v47, %v163_v46  ;;  %v496_v53 = vpack.c.bf16 %v442_v49, %v436_v48  ;;  %v129_v46 = vld [vmem:[#allocation2 + $0x148] sm:$0xff]  ;;  %v135_v47 = vld [vmem:[#allocation2 + $0x178] sm:$0xff] }
  0x8b   :  { %547 = vmatprep.subr.bf16.mxu1 %v466_v54  ;;  %310 = vmatprep.mubr.bf16.mxu0 %v85_v55  ;;  %v162_v54 = vld [vmem:[#allocation2 + $0x250] sm:$0xff]  ;;  %v402_v48 = vld [vmem:[#allocation6 + $0x148] sm:$0xff]  ;;  %v408_v49 = vld [vmem:[#allocation6 + $0x178] sm:$0xff] }
  0x8c   :  { %577 = vmatprep.mubr.bf16.mxu1 %v85_v55  ;;  %v168_v55 = vld [vmem:[#allocation2 + $0x280] sm:$0xff] }
  0x8d   :  { %v222_v62 = vpack.c.bf16 %v168_v55, %v162_v54  ;;  %v128_v54 = vld [vmem:[#allocation2 + $0x140] sm:$0xff]  ;;  %v134_v55 = vld [vmem:[#allocation2 + $0x170] sm:$0xff] }
  0x91   :  { %281 = vmatpush1.bf16.xpose.msra.mxu0 %v192_v2  ;;  %v174_v2 = vld [vmem:[#allocation2 + $0x2b0] sm:$0xff] }
  0x92   :  { %548 = vmatpush1.bf16.xpose.msra.mxu1 %v465_v3  ;;  %282 = vmatprep.subr.bf16.mxu0 %v199_v4  ;;  %v180_v3 = vld [vmem:[#allocation2 + $0x2e0] sm:$0xff]  ;;  %v447_v4 = vld [vmem:[#allocation6 + $0x2b0] sm:$0xff] }
  0x93   :  { %549 = vmatprep.subr.bf16.mxu1 %v472_v5  ;;  %v453_v5 = vld [vmem:[#allocation6 + $0x2e0] sm:$0xff]  ;;  %v228_v10 = vpack.c.bf16 %v180_v3, %v174_v2  ;;  %v146_v3 = vld [vmem:[#allocation2 + $0x1d0] sm:$0xff] }
  0x94   :  { %v501_v11 = vpack.c.bf16 %v453_v5, %v447_v4  ;;  %v140_v2 = vld [vmem:[#allocation2 + $0x1a0] sm:$0xff]  ;;  %v419_v5 = vld [vmem:[#allocation6 + $0x1d0] sm:$0xff] }
  0x95   :  { %v413_v4 = vld [vmem:[#allocation6 + $0x1a0] sm:$0xff] }
  0x99   :  { %283 = vmatpush1.bf16.xpose.msra.mxu0 %v198_v14  ;;  %v78_v14 = vld [vmem:[#allocation8 + $0x10] sm:$0xff] }
  0x9a   :  { %550 = vmatpush1.bf16.xpose.msra.mxu1 %v471_v15  ;;  %284 = vmatprep.subr.bf16.mxu0 %v205_v16  ;;  %v92_v15 = vld [vmem:[#allocation2 + $0x20] sm:$0xff]  ;;  %v98_v16 = vld [vmem:[#allocation2 + $0x50] sm:$0xff]  ;;  %v84_v21 = vpack.c.bf16 %v78_v14, %v78_v14 }
  0x9b   :  { %551 = vmatprep.subr.bf16.mxu1 %v478_v17  ;;  %v365_v17 = vld [vmem:[#allocation6 + $0x20] sm:$0xff]  ;;  %v188_v25 = vpack.c.bf16 %v98_v16, %v92_v15  ;;  %v158_v15 = vld [vmem:[#allocation2 + $0x230] sm:$0xff] }
  0x9c   :  { %v152_v14 = vld [vmem:[#allocation2 + $0x200] sm:$0xff] }
  0x9d   :  { %v425_v16 = vld [vmem:[#allocation6 + $0x200] sm:$0xff] }
  0xa1   :  { %285 = vmatpush1.bf16.xpose.msra.mxu0 %v204_v26  ;;  %v461_v26 = vpack.c.bf16 %v371_v18, %v365_v17  ;;  %v431_v17 = vld [vmem:[#allocation6 + $0x230] sm:$0xff]  ;;  %v165_v18 = vld [vmem:[#allocation2 + $0x268] sm:$0xff] }
  0xa2   :  { %552 = vmatpush1.bf16.xpose.msra.mxu1 %v477_v27  ;;  %286 = vmatprep.subr.bf16.mxu0 %v211_v28  ;;  %v195_v27 = vpack.c.bf16 %v111_v20, %v105_v19  ;;  %v468_v28 = vpack.c.bf16 %v384_v23, %v378_v22  ;;  %v171_v19 = vld [vmem:[#allocation2 + $0x298] sm:$0xff]  ;;  %v438_v20 = vld [vmem:[#allocation6 + $0x268] sm:$0xff]  ;;  %v218_v22 = vpack.c.bf16 %v158_v15, %v152_v14 }
  0xa3   :  { %553 = vmatprep.subr.bf16.mxu1 %v484_v29  ;;  %v87_v29 = vpack.c.bf16 %v81_v24, %v81_v24  ;;  %v491_v23 = vpack.c.bf16 %v431_v17, %v425_v16  ;;  %v225_v24 = vpack.c.bf16 %v171_v19, %v165_v18 }
  0xa9   :  { %287 = vmatpush1.bf16.xpose.msra.mxu0 %v210_v38  ;;  %v194_v38 = vpack.c.bf16 %v110_v31, %v104_v30  ;;  %v177_v30 = vld [vmem:[#allocation2 + $0x2c8] sm:$0xff]  ;;  %v183_v31 = vld [vmem:[#allocation2 + $0x2f8] sm:$0xff] }
  0xaa   :  { %554 = vmatpush1.bf16.xpose.msra.mxu1 %v483_v39  ;;  %288 = vmatprep.subr.bf16.mxu0 %v217_v40  ;;  %v467_v39 = vpack.c.bf16 %v383_v33, %v377_v32  ;;  %v201_v40 = vpack.c.bf16 %v123_v35, %v117_v34  ;;  %v450_v32 = vld [vmem:[#allocation6 + $0x2c8] sm:$0xff]  ;;  %v456_v33 = vld [vmem:[#allocation6 + $0x2f8] sm:$0xff] }
  0xab   :  { %555 = vmatprep.subr.bf16.mxu1 %v490_v41  ;;  %v474_v41 = vpack.c.bf16 %v396_v37, %v390_v36  ;;  %v231_v36 = vpack.c.bf16 %v183_v31, %v177_v30  ;;  %v504_v37 = vpack.c.bf16 %v456_v33, %v450_v32 }
  0xb1   :  { %289 = vmatpush1.bf16.xpose.msra.mxu0 %v216_v50  ;;  %v200_v50 = vpack.c.bf16 %v122_v43, %v116_v42 }
  0xb2   :  { %556 = vmatpush1.bf16.xpose.msra.mxu1 %v489_v51  ;;  %290 = vmatprep.subr.bf16.mxu0 %v223_v52  ;;  %v473_v51 = vpack.c.bf16 %v395_v45, %v389_v44  ;;  %v207_v52 = vpack.c.bf16 %v135_v47, %v129_v46  ;;  %v80_v44 = vld [vmem:[#allocation8 + $0x20] sm:$0xff] }
  0xb3   :  { %557 = vmatprep.subr.bf16.mxu1 %v496_v53  ;;  %v480_v53 = vpack.c.bf16 %v408_v49, %v402_v48  ;;  %v86_v45 = vpack.c.bf16 %v80_v44, %v80_v44 }
  0xb9   :  { %291 = vmatpush1.bf16.xpose.msra.mxu0 %v222_v62  ;;  %v206_v62 = vpack.c.bf16 %v134_v55, %v128_v54  ;;  %v631_v55 = vstv %s676_s3 }
  0xba   :  { %558 = vmatpush1.bf16.xpose.msra.mxu1 %v495_v63  ;;  %292 = vmatprep.subr.bf16.mxu0 %v229_v0  ;;  %v479_v63 = vpack.c.bf16 %v407_v57, %v401_v56  ;;  %v213_v0 = vpack.c.bf16 %v147_v59, %v141_v58 }
  0xbb   :  { %559 = vmatprep.subr.bf16.mxu1 %v502_v1  ;;  %v486_v1 = vpack.c.bf16 %v420_v61, %v414_v60 }
  0xc1   :  { %293 = vmatpush1.bf16.xpose.msra.mxu0 %v228_v10  ;;  %v212_v10 = vpack.c.bf16 %v146_v3, %v140_v2 }
  0xc2   :  { %560 = vmatpush1.bf16.xpose.msra.mxu1 %v501_v11  ;;  %318 = vmatprep.subr.bf16.mxu0 %v189_v12  ;;  %v485_v11 = vpack.c.bf16 %v419_v5, %v413_v4  ;;  %v219_v12 = vpack.c.bf16 %v159_v7, %v153_v6 }
  0xc3   :  { %585 = vmatprep.subr.bf16.mxu1 %v462_v13  ;;  %v492_v13 = vpack.c.bf16 %v432_v9, %v426_v8 }
  0xc8   :  { %311 = vmatmul.mubr.bf16.vlgmr.msra.gmra.mrb[0].mxu0 %v84_v21 }
  0xc9   :  { %319 = vmatpush1.bf16.xpose.msra.mxu0 %v188_v25  ;;  %578 = vmatmul.mubr.bf16.vlgmr.msra.gmra.mrb[0].mxu1 %v84_v21  ;;  %v444_v21 = vld [vmem:[#allocation6 + $0x298] sm:$0xff] }
  0xca   :  { %586 = vmatpush1.bf16.xpose.msra.mxu1 %v461_v26  ;;  %320 = vmatprep.subr.bf16.mxu0 %v195_v27  ;;  %v498_v25 = vpack.c.bf16 %v444_v21, %v438_v20  ;;  %v164_v26 = vld [vmem:[#allocation2 + $0x260] sm:$0xff]  ;;  %v170_v27 = vld [vmem:[#allocation2 + $0x290] sm:$0xff] }
  0xcb   :  { %587 = vmatprep.subr.bf16.mxu1 %v468_v28  ;;  %350 = vmatprep.mubr.bf16.mxu0 %v87_v29  ;;  %v437_v28 = vld [vmem:[#allocation6 + $0x260] sm:$0xff]  ;;  %v224_v34 = vpack.c.bf16 %v170_v27, %v164_v26 }
  0xcc   :  { %617 = vmatprep.mubr.bf16.mxu1 %v87_v29  ;;  %v443_v29 = vld [vmem:[#allocation6 + $0x290] sm:$0xff] }
  0xcd   :  { %v497_v35 = vpack.c.bf16 %v443_v29, %v437_v28 }
  0xd1   :  { %321 = vmatpush1.bf16.xpose.msra.mxu0 %v194_v38  ;;  %v176_v38 = vld [vmem:[#allocation2 + $0x2c0] sm:$0xff] }
  0xd2   :  { %588 = vmatpush1.bf16.xpose.msra.mxu1 %v467_v39  ;;  %322 = vmatprep.subr.bf16.mxu0 %v201_v40  ;;  %v182_v39 = vld [vmem:[#allocation2 + $0x2f0] sm:$0xff]  ;;  %v449_v40 = vld [vmem:[#allocation6 + $0x2c0] sm:$0xff] }
  0xd3   :  { %589 = vmatprep.subr.bf16.mxu1 %v474_v41  ;;  %v455_v41 = vld [vmem:[#allocation6 + $0x2f0] sm:$0xff]  ;;  %v230_v42 = vpack.c.bf16 %v182_v39, %v176_v38 }
  0xd4   :  { %v503_v43 = vpack.c.bf16 %v455_v41, %v449_v40 }
  0xd9   :  { %323 = vmatpush1.bf16.xpose.msra.mxu0 %v200_v50 }
  0xda   :  { %590 = vmatpush1.bf16.xpose.msra.mxu1 %v473_v51  ;;  %324 = vmatprep.subr.bf16.mxu0 %v207_v52 }
  0xdb   :  { %591 = vmatprep.subr.bf16.mxu1 %v480_v53 }
  0xe1   :  { %325 = vmatpush1.bf16.xpose.msra.mxu0 %v206_v62 }
  0xe2   :  { %592 = vmatpush1.bf16.xpose.msra.mxu1 %v479_v63  ;;  %326 = vmatprep.subr.bf16.mxu0 %v213_v0  ;;  %v634_v0 = vstv %s74_s9 }
  0xe3   :  { %593 = vmatprep.subr.bf16.mxu1 %v486_v1 }
  0xe9   :  { %327 = vmatpush1.bf16.xpose.msra.mxu0 %v212_v10 }
  0xea   :  { %594 = vmatpush1.bf16.xpose.msra.mxu1 %v485_v11  ;;  %328 = vmatprep.subr.bf16.mxu0 %v219_v12 }
  0xeb   :  { %595 = vmatprep.subr.bf16.mxu1 %v492_v13  ;;  %v236_v46 = vpop.permute.xlu0 %235 }
  0xf1   :  { %329 = vmatpush1.bf16.xpose.msra.mxu0 %v218_v22 }
  0xf2   :  { %596 = vmatpush1.bf16.xpose.msra.mxu1 %v491_v23  ;;  %330 = vmatprep.subr.bf16.mxu0 %v225_v24 }
  0xf3   :  { %597 = vmatprep.subr.bf16.mxu1 %v498_v25 }
  0xf9   :  { %331 = vmatpush1.bf16.xpose.msra.mxu0 %v224_v34 }
  0xfa   :  { %598 = vmatpush1.bf16.xpose.msra.mxu1 %v497_v35  ;;  %332 = vmatprep.subr.bf16.mxu0 %v231_v36 }
  0xfb   :  { %599 = vmatprep.subr.bf16.mxu1 %v504_v37 }
 0x101   :  { %333 = vmatpush1.bf16.xpose.msra.mxu0 %v230_v42 }
 0x102   :  { %600 = vmatpush1.bf16.xpose.msra.mxu1 %v503_v43 }
 0x108   :  { %351 = vmatmul.mubr.bf16.vlgmr.msra.gmra.mrb[0].mxu0 %v86_v45 }
 0x109   :  { %618 = vmatmul.mubr.bf16.vlgmr.msra.gmra.mrb[0].mxu1 %v86_v45 }
 0x1db   :  { %v352_v47 = vpop.f32.mrb[0].mxu0 }
 0x1dc   :  { %v677_v48 = vadd.f32 %v352_v47, %v236_v46  ;;  %v619_v49 = vpop.f32.mrb[0].mxu1  ;;  %v354_v50 = vpop.f32.mrb[1].mxu0 }
 0x1dd   :  { %v678_v51 = vadd.f32 %v619_v49, %v236_v46  ;;  %v621_v52 = vpop.f32.mrb[1].mxu1  ;;  %v355_v53 = vpop.f32.mrb[2].mxu0 }
 0x1de   :  { %vm358_vm0 = vcmp.ge.f32.partialorder %v677_v48, 0.0  ;;  %v359_v54 = vmul.f32 0.01, %v677_v48  ;;  %v622_v56 = vpop.f32.mrb[2].mxu1  ;;  %v356_v57 = vpop.f32.mrb[3].mxu0 }
 0x1df   :  { %vm625_vm1 = vcmp.ge.f32.partialorder %v678_v51, 0.0  ;;  %v626_v58 = vmul.f32 0.01, %v678_v51  ;;  %v623_v59 = vpop.f32.mrb[3].mxu1 }
 0x1e0   :  { %v360_v60 = vsel %vm358_vm0, %v677_v48, %v359_v54 }
 0x1e1   :  { %v628_v61 = vsub.f32 1.0, %v360_v60  ;;  %v632_v62 = vmul.f32 %v631_v55, %v360_v60  ;;  %v627_v63 = vsel %vm625_vm1, %v678_v51, %v626_v58 }
 0x1e2   :  { %v629_v1 = vsub.f32 1.0, %v627_v63  ;;  %v630_v2 = vmul.f32 %v627_v63, %v360_v60  ;;  %v635_v6 = vmul.f32 %v634_v0, %v627_v63 }
 0x1e3   :  { %v638_v3 = vmul.f32 %v631_v55, %v628_v61  ;;  %v643_v4 = vmul.f32 %v628_v61, %v627_v63 }
 0x1e4   :  { %v633_v5 = vadd.f32 %v632_v62, %v630_v2  ;;  %v637_v7 = vmul.f32 %v629_v1, %v628_v61  ;;  %v642_v8 = vmul.f32 %v629_v1, %v360_v60  ;;  %v640_v9 = vmul.f32 %v634_v0, %v629_v1 }
 0x1e6   :  { %v644_v10 = vadd.f32 %v643_v4, %v642_v8  ;;  %v636_v11 = vadd.f32 %v635_v6, %v633_v5  ;;  %v639_v12 = vadd.f32 %v638_v3, %v637_v7 }
 0x1e8   :  { %v645_v13 = vsub.f32 1.0, %v644_v10  ;;  %v641_v14 = vadd.f32 %v640_v9, %v639_v12 }
 0x1ea   :  { %704 = vrcp.f32 %v645_v13 }
 0x1f4   :  { %v705_v15 = vpop.eup %704 }
 0x1f5   :  { %v647_v16 = vmul.f32 %v705_v15, %v636_v11  ;;  %v648_v17 = vmul.f32 %v705_v15, %v641_v14 }
 0x1f7   :  { %v649_v18 = vsub.f32 %v648_v17, %v647_v16  ;;  %657 = vst [vmem:[#allocation10 + $0x4] sm:$0x3] %v647_v16  ;;  %658 = vst [vmem:[#allocation10 + $0x6] sm:$0x3] %v648_v17 }
 0x1f9   :  { %v650_v19 = vmul.f32 1.442695, %v649_v18 }
 0x1fb   :  { %706 = vpow2.f32 %v650_v19 }
 0x205   :  { %v707_v20 = vpop.eup %706 }
 0x206   :  { %v652_v21 = vadd.f32 1.0, %v707_v20 }
 0x208   :  { %708 = vrcp.f32 %v652_v21 }
 0x212   :  { %v709_v22 = vpop.eup %708 }
 0x213   :  { %v654_v23 = vsub.f32 1.0, %v709_v22  ;;  %655 = vst [vmem:[#allocation10] sm:$0x3] %v709_v22 }
 0x215   :  { %656 = vst [vmem:[#allocation10 + $0x2] sm:$0x3] %v654_v23 }
 0x216   :  { %799 = shalt.err (!%p796_p5)
}
 0x217   :  { %s800_s15 = scalar_lea.hbm %s922_s5, 128 }
 0x218   :  { %p801_p6 = scmp.ne.s32.totalorder %s922_s5, %s800_s15  ;;  %p804_p7 = scmp.lt.u32.totalorder %s800_s15, %s922_s5 }
 0x21a   :  { %p806_p8 = pnand %p804_p7, %p801_p6 }
 0x21c   :  { %809 = shalt.err (!%p806_p8)
}
 0x21d   :  { %668 = dma.vmem_to_hbm [thread:$0]  %s666_s11, 128, %s922_s5, [#allocation4]  }
 0x21e   :  { %816 = dma.done.wait [#allocation4], 128  }
 0x21f   :  { %817 = vsyncadd [#allocation4], 4294967168 }
 0x220   :  { %672 = vsyncpa [#allocation3], 1 }
 0x221   :  { %673 = vsyncpa [#allocation7], 1 }
 0x222   :  { %674 = vsyncpa [#allocation4], 1 }
 0x223   :  { %675 = vsyncpa [#allocation5], 1 }

</bundles_post_ra>
